<compile_context>
chip_gen: v7x
topology: tpu7x:2x2x1
jax: 0.10.0
libtpu: 0.0.40
codegen_flags: <defaults>
</compile_context>

<pallas_src>
import functools

import jax
import jax.numpy as jnp
import numpy as np
from jax.experimental import pallas as pl
from jax.experimental.pallas import tpu as pltpu


def _round_up(x, m):
    return (x + m - 1) // m * m


def _pick_tile_s(S, C, logit_itemsize, tgt_itemsize):
    """Largest lane tile (multiple of 128, capped at 2048) whose double-buffered
    streamed tensors stay within ~8 MiB of VMEM, so the pipeline keeps full
    depth on every generation (v7x scoped default is 32 MiB)."""
    s128 = _round_up(max(S, 1), 128)
    # bytes per lane, double-buffered: logits in + target in + f32 loss out
    per_lane = 2 * (C * logit_itemsize + tgt_itemsize + 4)
    budget = 8 * 1024 * 1024
    cap = max(128, (budget // per_lane) // 128 * 128)
    return int(min(s128, 2048, cap))


def _ce_kernel(logits_ref, tgt_ref, loss_ref):
    # logits_ref: (1, C, TS) native dtype; tgt_ref: (1, 1, TS) int; loss_ref: (1, 1, TS) f32
    logits = logits_ref[0].astype(jnp.float32)                         # (C, TS)
    tgt = tgt_ref[0].astype(jnp.int32)                                 # (1, TS)

    # numerically stable log-sum-exp over the class (sublane) axis
    m = jnp.max(logits, axis=0, keepdims=True)                         # (1, TS)
    lse = m + jnp.log(jnp.sum(jnp.exp(logits - m), axis=0, keepdims=True))

    # gather logits[target] via compare-select over the class axis
    ids = jax.lax.broadcasted_iota(jnp.int32, logits.shape, 0)         # (C, TS)
    onehot = ids == tgt                                                # (C, TS) bool
    tgt_logit = jnp.sum(jnp.where(onehot, logits, 0.0), axis=0, keepdims=True)

    # negative targets (torch's ignore_index=-100) -> 0 loss, matching torch
    loss = jnp.where(tgt >= 0, lse - tgt_logit, 0.0)
    loss_ref[0] = loss.astype(loss_ref.dtype)


def _ce_kernel_weighted(logits_ref, tgt_ref, w_ref, loss_ref):
    logits = logits_ref[0].astype(jnp.float32)                         # (C, TS)
    tgt = tgt_ref[0].astype(jnp.int32)                                 # (1, TS)
    w = w_ref[...].astype(jnp.float32)                                 # (C, 1)

    m = jnp.max(logits, axis=0, keepdims=True)
    lse = m + jnp.log(jnp.sum(jnp.exp(logits - m), axis=0, keepdims=True))

    ids = jax.lax.broadcasted_iota(jnp.int32, logits.shape, 0)
    onehot = ids == tgt
    tgt_logit = jnp.sum(jnp.where(onehot, logits, 0.0), axis=0, keepdims=True)
    w_tgt = jnp.sum(jnp.where(onehot, w, 0.0), axis=0, keepdims=True)  # 0 for ignored tgt

    loss_ref[0] = (w_tgt * (lse - tgt_logit)).astype(loss_ref.dtype)


def _per_element_ce(logits_ncs, target_n1s, weight_c1, *, tile_s):
    """logits_ncs: (N, C, S_pad) any float dtype; target_n1s: (N, 1, S_pad) int;
    weight_c1: optional (C, 1) float."""
    N, C, S_pad = logits_ncs.shape
    assert S_pad % tile_s == 0
    grid = (N, S_pad // tile_s)

    logit_spec = pl.BlockSpec((1, C, tile_s), lambda n, s: (n, 0, s))
    tgt_spec = pl.BlockSpec((1, 1, tile_s), lambda n, s: (n, 0, s))
    out_spec = pl.BlockSpec((1, 1, tile_s), lambda n, s: (n, 0, s))

    common = dict(
        out_shape=jax.ShapeDtypeStruct((N, 1, S_pad), jnp.float32),
        compiler_params=pltpu.CompilerParams(
            dimension_semantics=("parallel", "parallel"),
            vmem_limit_bytes=32 * 1024 * 1024,
        ),
    )

    if weight_c1 is None:
        return pl.pallas_call(
            _ce_kernel,
            grid_spec=pltpu.PrefetchScalarGridSpec(
                num_scalar_prefetch=0,
                grid=grid,
                in_specs=[logit_spec, tgt_spec],
                out_specs=out_spec,
            ),
            **common,
        )(logits_ncs, target_n1s)

    return pl.pallas_call(
        _ce_kernel_weighted,
        grid_spec=pltpu.PrefetchScalarGridSpec(
            num_scalar_prefetch=0,
            grid=grid,
            in_specs=[logit_spec, tgt_spec,
                      pl.BlockSpec((C, 1), lambda n, s: (0, 0))],
            out_specs=out_spec,
        ),
        **common,
    )(logits_ncs, target_n1s, weight_c1)


@functools.partial(jax.jit, static_argnames=("top_k", "reduce"))
def topk_cross_entropy(logits_nchw, target_nhw, weight=None, *, top_k=0.5, reduce=True):
    """Forward pass of TopkCrossEntropy.

    logits_nchw: (N, C, H, W) float (any float dtype; streamed natively)
    target_nhw : (N, H, W) int class indices
    weight     : optional (C,) per-class weights
    """
    N, C, H, W = logits_nchw.shape
    S = H * W

    # Keep the native logits dtype (bf16 stays bf16) -> half the HBM traffic
    # on the memory-bound CE stream; math is promoted to f32 inside the kernel.
    logits_ncs = logits_nchw.reshape(N, C, S)
    # Targets kept int32 for robust lowering; the kernel widens via astype, so
    # callers with tiny C could pass int16/int8 to shave a further ~10% HBM.
    target_n1s = target_nhw.reshape(N, 1, S).astype(jnp.int32)
    weight_c1 = None if weight is None else weight.reshape(C, 1)

    tile_s = _pick_tile_s(S, C, logits_ncs.dtype.itemsize, target_n1s.dtype.itemsize)
    S_pad = _round_up(S, tile_s)
    if S_pad != S:
        pad = S_pad - S
        logits_ncs = jnp.pad(logits_ncs, ((0, 0), (0, 0), (0, pad)))
        target_n1s = jnp.pad(target_n1s, ((0, 0), (0, 0), (0, pad)))

    loss = _per_element_ce(logits_ncs, target_n1s, weight_c1, tile_s=tile_s)  # (N,1,S_pad)
    loss = loss.reshape(N, S_pad)[:, :S]        # drop padded lanes before top-k

    # TODO(synk): exact torch.topk with k=0.5*S lowers to a full sort and
    # dominates wall clock; lax.approx_max_k would be faster but changes the
    # result, so the exact path is kept to preserve module semantics.
    k = max(1, int(top_k * S))
    u, _ = jax.lax.top_k(loss, k)               # (N, k)
    if reduce:
        return jnp.mean(u)
    return jnp.mean(u, axis=1)


def _reference(logits_nchw, target_nhw, weight=None, *, top_k=0.5, reduce=True):
    """Pure-JAX reference matching torch.nn.CrossEntropyLoss(reduction='none')."""
    N, C, H, W = logits_nchw.shape
    S = H * W
    x = logits_nchw.reshape(N, C, S).astype(jnp.float32)
    t = target_nhw.reshape(N, S).astype(jnp.int32)
    logz = jax.nn.logsumexp(x, axis=1)                               # (N, S)
    xt = jnp.take_along_axis(x, t[:, None, :], axis=1)[:, 0, :]      # (N, S)
    loss = logz - xt
    if weight is not None:
        loss = loss * weight[t]
    k = max(1, int(top_k * S))
    u, _ = jax.lax.top_k(loss, k)
    return jnp.mean(u) if reduce else jnp.mean(u, axis=1)


if __name__ == "__main__":
    key = jax.random.PRNGKey(0)
    k1, k2, k3 = jax.random.split(key, 3)

    N, C, H, W = 2, 4, 16, 16
    logits = jax.random.normal(k1, (N, C, H, W), jnp.float32)
    target = jax.random.randint(k2, (N, H, W), 0, C, jnp.int32)
    weight = jax.random.uniform(k3, (C,), jnp.float32, minval=0.5, maxval=1.5)

    # reduce=True, no weight
    out = jax.block_until_ready(topk_cross_entropy(logits, target, top_k=0.5, reduce=True))
    ref = jax.block_until_ready(_reference(logits, target, top_k=0.5, reduce=True))
    assert np.allclose(np.asarray(out), np.asarray(ref), rtol=1e-5, atol=1e-5), (out, ref)

    # reduce=False
    out_rows = jax.block_until_ready(
        topk_cross_entropy(logits, target, top_k=0.5, reduce=False))
    ref_rows = jax.block_until_ready(
        _reference(logits, target, top_k=0.5, reduce=False))
    assert np.allclose(np.asarray(out_rows), np.asarray(ref_rows), rtol=1e-5, atol=1e-5)

    # weighted path
    out_w = jax.block_until_ready(
        topk_cross_entropy(logits, target, weight, top_k=0.5, reduce=True))
    ref_w = jax.block_until_ready(
        _reference(logits, target, weight, top_k=0.5, reduce=True))
    assert np.allclose(np.asarray(out_w), np.asarray(ref_w), rtol=1e-5, atol=1e-5), (out_w, ref_w)

    # bf16 logits streamed natively through the kernel
    out_bf = jax.block_until_ready(
        topk_cross_entropy(logits.astype(jnp.bfloat16), target, top_k=0.5, reduce=True))
    ref_bf = jax.block_until_ready(
        _reference(logits.astype(jnp.bfloat16), target, top_k=0.5, reduce=True))
    assert np.allclose(np.asarray(out_bf), np.asarray(ref_bf), rtol=5e-3, atol=5e-3)

    print("KERNEL_OK")
</pallas_src>

<mosaic_0001>
module attributes {stable_mosaic.version = 11 : i64} {
  func.func @_ce_kernel(%arg0: i32, %arg1: i32, %arg2: memref<1x4x256xf32, #tpu.memory_space<vmem>>, %arg3: memref<1x1x256xi32, #tpu.memory_space<vmem>>, %arg4: memref<1x1x256xf32, #tpu.memory_space<vmem>>) attributes {dimension_semantics = [#tpu.dimension_semantics<parallel>, #tpu.dimension_semantics<parallel>], iteration_bounds = array<i64: 2, 1>, scalar_prefetch = 0 : i64, scratch_operands = 0 : i64, tpu.core_type = #tpu.core_type<tc>, window_params = [{transform_indices = @transform_0, window_bounds = array<i64: 1, 4, 256>}, {transform_indices = @transform_1, window_bounds = array<i64: 1, 1, 256>}, {transform_indices = @transform_2, window_bounds = array<i64: 1, 1, 256>}]} {
    %c0 = arith.constant 0 : index
    %c0_0 = arith.constant 0 : index
    %c0_1 = arith.constant 0 : index
    %0 = vector.load %arg2[%c0, %c0_0, %c0_1] : memref<1x4x256xf32, #tpu.memory_space<vmem>>, vector<1x4x256xf32>
    %1 = vector.shape_cast %0 : vector<1x4x256xf32> to vector<4x256xf32>
    %c0_2 = arith.constant 0 : index
    %c0_3 = arith.constant 0 : index
    %c0_4 = arith.constant 0 : index
    %2 = vector.load %arg3[%c0_2, %c0_3, %c0_4] : memref<1x1x256xi32, #tpu.memory_space<vmem>>, vector<1x1x256xi32>
    %3 = vector.shape_cast %2 : vector<1x1x256xi32> to vector<1x256xi32>
    %cst = arith.constant dense<0xFF800000> : vector<256xf32>
    %4 = vector.multi_reduction <maximumf>, %1, %cst [0] : vector<4x256xf32> to vector<256xf32>
    %5 = vector.shape_cast %4 : vector<256xf32> to vector<1x256xf32>
    %6 = vector.broadcast %5 : vector<1x256xf32> to vector<4x256xf32>
    %7 = arith.subf %1, %6 : vector<4x256xf32>
    %8 = math.exp %7 : vector<4x256xf32>
    %cst_5 = arith.constant dense<0.000000e+00> : vector<256xf32>
    %9 = vector.multi_reduction <add>, %8, %cst_5 [0] : vector<4x256xf32> to vector<256xf32>
    %10 = vector.shape_cast %9 : vector<256xf32> to vector<1x256xf32>
    %11 = math.log %10 : vector<1x256xf32>
    %12 = arith.addf %5, %11 : vector<1x256xf32>
    %13 = tpu.iota {dimensions = array<i32: 0>} : vector<4x256xi32>
    %14 = vector.broadcast %3 : vector<1x256xi32> to vector<4x256xi32>
    %15 = arith.cmpi eq, %13, %14 : vector<4x256xi32>
    %cst_6 = arith.constant 0.000000e+00 : f32
    %16 = vector.broadcast %cst_6 : f32 to vector<4x256xf32>
    %17 = arith.select %15, %1, %16 : vector<4x256xi1>, vector<4x256xf32>
    %cst_7 = arith.constant dense<0.000000e+00> : vector<256xf32>
    %18 = vector.multi_reduction <add>, %17, %cst_7 [0] : vector<4x256xf32> to vector<256xf32>
    %19 = vector.shape_cast %18 : vector<256xf32> to vector<1x256xf32>
    %c0_i32 = arith.constant 0 : i32
    %20 = vector.broadcast %c0_i32 : i32 to vector<1x256xi32>
    %21 = arith.cmpi sge, %3, %20 : vector<1x256xi32>
    %22 = arith.subf %12, %19 : vector<1x256xf32>
    %cst_8 = arith.constant 0.000000e+00 : f32
    %23 = vector.broadcast %cst_8 : f32 to vector<1x256xf32>
    %24 = arith.select %21, %22, %23 : vector<1x256xi1>, vector<1x256xf32>
    %c0_9 = arith.constant 0 : index
    %c0_10 = arith.constant 0 : index
    %c0_11 = arith.constant 0 : index
    %25 = vector.load %arg4[%c0_9, %c0_10, %c0_11] : memref<1x1x256xf32, #tpu.memory_space<vmem>>, vector<1x1x256xf32>
    %26 = vector.shape_cast %25 : vector<1x1x256xf32> to vector<1x256xf32>
    %27 = vector.shape_cast %24 : vector<1x256xf32> to vector<1x1x256xf32>
    tpu.vector_store %arg4[%c0_9, %c0_10, %c0_11], %27 {strides = array<i32>} : memref<1x1x256xf32, #tpu.memory_space<vmem>>, vector<1x1x256xf32>,
    return
  }
  func.func @transform_0(%arg0: i32, %arg1: i32) -> (i32, i32, i32) {
    %c0_i32 = arith.constant 0 : i32
    %c0_i32_0 = arith.constant 0 : i32
    return %arg0, %c0_i32, %arg1 : i32, i32, i32
  }
  func.func @transform_1(%arg0: i32, %arg1: i32) -> (i32, i32, i32) {
    %c0_i32 = arith.constant 0 : i32
    %c0_i32_0 = arith.constant 0 : i32
    return %arg0, %c0_i32, %arg1 : i32, i32, i32
  }
  func.func @transform_2(%arg0: i32, %arg1: i32) -> (i32, i32, i32) {
    %c0_i32 = arith.constant 0 : i32
    %c0_i32_0 = arith.constant 0 : i32
    return %arg0, %c0_i32, %arg1 : i32, i32, i32
  }
}

</mosaic_0001>

<bundles_post_ra>
// kernel: topk_cross_entropy.1
= control target key start
LH: loop header
LB: loop body
LE: loop exit
PB: predicated region body
PF: predicated region fallthrough
CT: control target
= control target key end

     0   :  { %s499_s9 = smov 0   ;;  %s501_s10 = smov 0   ;;  %s551_s0 = inlined_call_operand.vmem [shape: f32[2,4,256], index: 0, kind: input, shape index: {}]   ;;  %s552_s1 = inlined_call_operand.vmem [shape: s32[2,1,256], index: 1, kind: input, shape index: {}]   ;;  %s553_s2 = inlined_call_operand.vmem [shape: f32[2,1,256], index: 2, kind: output, shape index: {}]  }
   0x1   :  { %s503_s11 = smov 0  }
   0x2 LB: > { %s24_s12 = sadd.s32 1, %s477_s10  ;;  %p419_p0 = scmp.ge.s32.totalorder %s481_s11, 1  ;;  %s481_s11 = sphi %s503_s11, %s12_s11   ;;  %s477_s10 = sphi %s501_s10, %s555_s10   ;;  %s473_s9 = sphi %s499_s9, %s554_s9  }
   0x3   : > { %p26_p1 = scmp.ge.s32.totalorder %s24_s12, 2  ;;  %p149_p2 = scmp.lt.s32.totalorder %s481_s11, 3 }
   0x5   : > { %s557_s12 = smov (%p26_p1, %s24_s12), 0  ;;  %p150_p3 = pnand %p419_p0, %p149_p2 }
   0x6   : > { %p187_p4 = scmp.lt.s32.totalorder (!%p150_p3), %s473_s9, 1  ;;  %vm219_vm0 = vcmask (!%p150_p3), 1043456   ;;  %v264_v15 = vlaneseq (!%p150_p3)  ;;  %v483_v56 = vmov (!%p150_p3), 1966171168  }
   0x7   : > { %153 = sbr.rel (%p150_p3) target bundleno = 90 (0x5a), region = 28  ;;  %v299_v57 = vunpack.c.l.s4 (!%p150_p3), %v483_v56 }
   0x8   : > { %v265_v18 = vshrl.u32 (!%p150_p3), %v264_v15, 7  ;;  %vm316_vm4 = vcmp.lt.s32.totalorder (!%p150_p3), %v264_v15, 256 }
   0xa   : > { %v268_v21 = vsub.s32 (!%p150_p3), 0, %v265_v18  ;;  %v272_v23 = vsub.s32 (!%p150_p3), 1, %v265_v18 }
   0xe   : > { %s559_s9 = smov (!%p187_p4, %s473_s9), 1 }
   0xf   : > { %s426_s13 = sshll.u32 %s559_s9, 3  ;;  %s422_s17 = sshll.u32 %s559_s9, 1 }
  0x10   : > { %s194_s16 = scalar_lea.vmem %s551_s0, %s426_s13  ;;  %s203_s20 = scalar_lea.vmem %s552_s1, %s422_s17 }
  0x11   : > { %v214_v0 = vld [vmem:[%s194_s16] sm:$0xff]  ;;  %s212_s23 = scalar_lea.vmem %s553_s2, %s422_s17 }
  0x12   : > { %v217_v1 = vcombine.high %v214_v0, %v214_v0  ;;  %v220_v2 = vsel %vm219_vm0, %v214_v0, -inf  ;;  %v215_v22 = vld [vmem:[%s203_s20] sm:$0x3] }
  0x13   : > { %v221_v3 = vrot.slane %v220_v2, 4  ;;  %v269_v24 = vrot.slane %v215_v22, %v268_v21  ;;  %v273_v25 = vrot.slane %v215_v22, %v272_v23  ;;  %vm292_vm3 = vcmp.ge.s32.totalorder %v215_v22, 0 }
  0x14   : > { %v227_v4 = vsel %vm219_vm0, %v217_v1, -inf }
  0x15   : > { %v222_v5 = vmax.f32 %v220_v2, %v221_v3  ;;  %v228_v6 = vrot.slane %v227_v4, 4  ;;  %vm274_vm1 = vcmp.eq.s32.totalorder %v265_v18, %v269_v24  ;;  %vm275_vm2 = vcmp.eq.s32.totalorder %v265_v18, %v273_v25 }
  0x16   : > { %v276_v26 = vsel %vm274_vm1, %v214_v0, 0.0  ;;  %v277_v30 = vsel %vm275_vm2, %v217_v1, 0.0  ;;  %v300_v1 = vunpack.c.0.s8 %v299_v57 }
  0x17   : > { %v223_v7 = vrot.slane %v222_v5, 2  ;;  %v229_v8 = vmax.f32 %v227_v4, %v228_v6  ;;  %v278_v32 = vsel %vm219_vm0, %v276_v26, 0.0  ;;  %v285_v36 = vsel %vm219_vm0, %v277_v30, 0.0 }
  0x18   : > { %v279_v37 = vrot.slane %v278_v32, 4  ;;  %v286_v40 = vrot.slane %v285_v36, 4 }
  0x19   : > { %v224_v9 = vmax.f32 %v222_v5, %v223_v7  ;;  %v230_v10 = vrot.slane %v229_v8, 2  ;;  %v303_v5 = vsub.s32 %v300_v1, %v265_v18 }
  0x1a   : > { %v280_v43 = vadd.f32 %v279_v37, %v278_v32  ;;  %v287_v46 = vadd.f32 %v286_v40, %v285_v36 }
  0x1b   : > { %v225_v11 = vrot.slane %v224_v9, 1  ;;  %v231_v12 = vmax.f32 %v229_v8, %v230_v10 }
  0x1c   : > { %v281_v49 = vrot.slane %v280_v43, 2  ;;  %v288_v51 = vrot.slane %v287_v46, 2 }
  0x1d   : > { %v226_v13 = vmax.f32 %v224_v9, %v225_v11  ;;  %v232_v14 = vrot.slane %v231_v12, 1 }
  0x1e   : > { %v282_v52 = vadd.f32 %v281_v49, %v280_v43  ;;  %v289_v53 = vadd.f32 %v288_v51, %v287_v46 }
  0x1f   : > { %v233_v16 = vmax.f32 %v231_v12, %v232_v14 }
  0x20   : > { %v283_v54 = vrot.slane %v282_v52, 1  ;;  %v290_v55 = vrot.slane %v289_v53, 1 }
  0x21   : > { %v236_v17 = vcombine.low %v226_v13, %v233_v16 }
  0x22   : > { %v284_v60 = vadd.f32 %v283_v54, %v282_v52 }
  0x23   : > { %v238_v19 = vsub.f32 %v214_v0, %v236_v17  ;;  %v291_v0 = vadd.f32 %v290_v55, %v289_v53 }
  0x25   : > { %v239_v20 = vmul.f32 1.442695, %v238_v19 }
  0x27   : > { %453 = vpow2.f32 %v239_v20 }
  0x31   : > { %v454_v27 = vpop.eup %453 }
  0x32   : > { %v242_v28 = vcombine.high %v454_v27, %v454_v27  ;;  %v244_v29 = vsel %vm219_vm0, %v454_v27, 0.0 }
  0x33   : > { %v245_v31 = vrot.slane %v244_v29, 4 }
  0x34   : > { %v251_v33 = vsel %vm219_vm0, %v242_v28, 0.0 }
  0x35   : > { %v246_v34 = vadd.f32 %v245_v31, %v244_v29  ;;  %v252_v35 = vrot.slane %v251_v33, 4 }
  0x37   : > { %v247_v38 = vrot.slane %v246_v34, 2  ;;  %v253_v39 = vadd.f32 %v252_v35, %v251_v33 }
  0x39   : > { %v248_v41 = vadd.f32 %v247_v38, %v246_v34  ;;  %v254_v42 = vrot.slane %v253_v39, 2 }
  0x3b   : > { %v249_v44 = vrot.slane %v248_v41, 1  ;;  %v255_v45 = vadd.f32 %v254_v42, %v253_v39 }
  0x3d   : > { %v250_v47 = vadd.f32 %v249_v44, %v248_v41  ;;  %v256_v48 = vrot.slane %v255_v45, 1 }
  0x3f   : > { %v257_v50 = vadd.f32 %v256_v48, %v255_v45  ;;  %455 = vlog2.f32 %v250_v47 }
  0x41   : > { %457 = vlog2.f32 %v257_v50 }
  0x49   : > { %v456_v58 = vpop.eup %455 }
  0x4a   : > { %v259_v59 = vmul.f32 0.6931472, %v456_v58 }
  0x4b   : > { %v458_v61 = vpop.eup %457 }
  0x4c   : > { %v261_v62 = vmul.f32 0.6931472, %v458_v61  ;;  %v262_v63 = vadd.f32 %v259_v59, %v226_v13 }
  0x4e   : > { %v263_v2 = vadd.f32 %v261_v62, %v233_v16  ;;  %v293_v3 = vsub.f32 %v262_v63, %v284_v60 }
  0x50   : > { %v294_v4 = vsub.f32 %v263_v2, %v291_v0 }
  0x52   : > { %v297_v6 = vcombine.low %v293_v3, %v294_v4 }
  0x54   : > { %v304_v7 = vrot.slane %v297_v6, %v303_v5 }
  0x56   : > { %v311_v8 = vrot.slane %v304_v7, %v303_v5 }
  0x58   : > { %v313_v9 = vsel %vm292_vm3, %v311_v8, 0.0 }
  0x59   : > { %318 = vst.msk [vmem:[%s212_s23] sm:$0x3] %vm316_vm4, %v313_v9 }
  0x5a PF: > { %s12_s11 = sadd.s32 1, %s481_s11   ;;  %s554_s9 = smov %s477_s10 }
  0x5b   : > { %p9_p5 = scmp.ge.s32.totalorder %s12_s11, 4   ;;  %s555_s10 = smov %s557_s12 }
  0x5d   :  { %11 = sbr.rel (!%p9_p5) target bundleno = 2 (0x2), region = 61 }

</bundles_post_ra>
